<compile_context>
chip_gen: v5e
topology: v5e:2x2
jax: 0.10.0
libtpu: 0.0.40
codegen_flags: <defaults>
</compile_context>

<pallas_src>
import functools

import jax
import jax.numpy as jnp
from jax import lax
from jax.experimental import pallas as pl
from jax.experimental.pallas import tpu as pltpu


def _round_up(x, m):
    return ((x + m - 1) // m) * m


def _focal_loss_kernel(logits_ref, targets_ref, out_ref, *, n_total, tile_n, gamma,
                       has_padding):
    # logits_ref: (TILE_N, C) float, targets_ref: (TILE_N, 1) int32,
    # out_ref: (1, 1, 1) f32 per-tile partial (-sum of focal terms).
    x = logits_ref[...]
    if x.dtype != jnp.float32:
        x = x.astype(jnp.float32)                                  # bf16 inputs upcast in VMEM
    t = targets_ref[...]                                           # (TILE_N, 1) int32

    # Stable log-softmax pieces along the lane (class) axis; reuse xm for both the
    # exp-sum and the target gather to keep per-element VALU work minimal.
    m = jnp.max(x, axis=1, keepdims=True)                          # (TILE_N, 1)
    xm = x - m                                                     # (TILE_N, C)
    sum_exp = jnp.sum(jnp.exp(xm), axis=1, keepdims=True)          # (TILE_N, 1)

    # Gather (x - m)[i, t_i] via one-hot compare+select (no dynamic gather on TPU).
    col = lax.broadcasted_iota(jnp.int32, xm.shape, 1)             # (TILE_N, C)
    picked_xm = jnp.sum(jnp.where(col == t, xm, 0.0), axis=1, keepdims=True)

    log_p_t = picked_xm - jnp.log(sum_exp)                         # log softmax at target
    p_t = jnp.exp(log_p_t)
    q = 1.0 - p_t
    if gamma == 2:
        mod = q * q                                                # VALU square, not EUP pow
    elif float(gamma) == int(gamma) and gamma >= 0:
        mod = jnp.ones_like(q)
        for _ in range(int(gamma)):
            mod = mod * q
    else:
        # Non-integer gamma: q == 0 (p_t -> 1) hits log(0) inside pow; benign for gamma > 0.
        mod = q ** jnp.float32(gamma)
    focal_t = mod * log_p_t                                        # (TILE_N, 1)

    if has_padding:
        i = pl.program_id(0)
        last = pl.num_programs(0) - 1

        @pl.when(i == last)                                        # only last tile has pad rows
        def _masked():
            row = i * tile_n + lax.broadcasted_iota(jnp.int32, (tile_n, 1), 0)
            fm = jnp.where(row < n_total, focal_t, 0.0)
            out_ref[...] = -jnp.sum(fm, axis=0, keepdims=True).reshape(1, 1, 1)

        @pl.when(i != last)
        def _unmasked():
            out_ref[...] = -jnp.sum(focal_t, axis=0, keepdims=True).reshape(1, 1, 1)
    else:
        out_ref[...] = -jnp.sum(focal_t, axis=0, keepdims=True).reshape(1, 1, 1)


def focal_loss(logits, targets, gamma=2, tile_n=None):
    """FocalLoss(weight=None, gamma).forward for (N, C) logits and (N,) int targets.

    Prefer bf16 `logits` for large N*C: the kernel is HBM-bound and upcasts internally.
    """
    n, c = logits.shape
    itemsize = jnp.dtype(logits.dtype).itemsize

    if tile_n is None:
        # Byte-budgeted tiles: ~8 MiB per (logits + lane-padded targets) tile pair.
        # Double-buffered inputs (~16 MiB) plus full-size f32 temporaries stay well inside
        # the 48 MiB scoped-VMEM request below on every generation (v7x: 64 MiB physical).
        row_bytes = c * itemsize + 128 * 4     # logits row + (TILE_N, 1) i32 lane padding
        tile_budget = 8 * 1024 * 1024
        tile_n = max(8, ((tile_budget // row_bytes) // 8) * 8)
        tile_n = min(tile_n, _round_up(n, 8))
    assert tile_n % 8 == 0

    n_pad = _round_up(n, tile_n)
    t2d = targets.astype(jnp.int32).reshape(n, 1)
    if n_pad != n:
        logits = jnp.pad(logits, ((0, n_pad - n), (0, 0)))
        t2d = jnp.pad(t2d, ((0, n_pad - n), (0, 0)))

    n_tiles = n_pad // tile_n
    kernel = functools.partial(
        _focal_loss_kernel, n_total=n, tile_n=tile_n, gamma=gamma,
        has_padding=(n_pad != n),
    )

    partials = pl.pallas_call(
        kernel,
        out_shape=jax.ShapeDtypeStruct((n_tiles, 1, 1), jnp.float32),
        grid=(n_tiles,),
        in_specs=[
            pl.BlockSpec((tile_n, c), lambda i: (i, 0)),
            pl.BlockSpec((tile_n, 1), lambda i: (i, 0)),
        ],
        out_specs=pl.BlockSpec((1, 1, 1), lambda i: (i, 0, 0)),
        compiler_params=pltpu.CompilerParams(
            # Independent per-tile partial sums -> shard the N-tile axis across
            # TensorCores on v7x; neutral on v5e/v6e (1 TC).
            dimension_semantics=("parallel",),
            vmem_limit_bytes=48 * 1024 * 1024,
        ),
        cost_estimate=pl.CostEstimate(
            flops=8 * n * c,
            transcendentals=n * c + 2 * n,
            bytes_accessed=n * c * itemsize + n * 4 + n_tiles * 4,
        ),
    )(logits, t2d)

    # Single pairwise reduction over per-tile partials (better precision than a serial
    # running accumulator), then the mean over the true (unpadded) N.
    return jnp.sum(partials) / jnp.float32(n)


def focal_loss_ref(logits, targets, gamma=2):
    # Pure-JAX reference mirroring the PyTorch module.
    x = logits.astype(jnp.float32)
    log_sm = jax.nn.log_softmax(x, axis=1)
    p = jax.nn.softmax(x, axis=1)
    focal = (1.0 - p) ** gamma * log_sm
    picked = jnp.take_along_axis(focal, targets[:, None].astype(jnp.int32), axis=1)[:, 0]
    return -jnp.mean(picked)


if __name__ == "__main__":
    key = jax.random.PRNGKey(0)
    k1, k2 = jax.random.split(key)
    N, C = 20, 32  # N deliberately not a multiple of the 8-row tile to exercise masking
    logits = jax.random.normal(k1, (N, C), dtype=jnp.float32)
    targets = jax.random.randint(k2, (N,), 0, C, dtype=jnp.int32)

    ref = focal_loss_ref(logits, targets)

    # Small explicit tile: 3 parallel grid steps, last tile masked.
    out = focal_loss(logits, targets, tile_n=8)
    jax.block_until_ready(out)
    assert jnp.allclose(out, ref, atol=1e-5, rtol=1e-5), (out, ref)

    # Auto (byte-budgeted) tile: single tile covering all rows, still masked.
    out_auto = focal_loss(logits, targets)
    jax.block_until_ready(out_auto)
    assert jnp.allclose(out_auto, ref, atol=1e-5, rtol=1e-5), (out_auto, ref)

    # Preferred bf16 input path (halves HBM traffic; kernel upcasts to f32 internally).
    logits_bf16 = logits.astype(jnp.bfloat16)
    out_bf16 = focal_loss(logits_bf16, targets, tile_n=8)
    jax.block_until_ready(out_bf16)
    ref_bf16 = focal_loss_ref(logits_bf16.astype(jnp.float32), targets)
    assert jnp.allclose(out_bf16, ref_bf16, atol=1e-4, rtol=1e-4), (out_bf16, ref_bf16)

    print("KERNEL_OK")
</pallas_src>

<mosaic_0001>
module attributes {stable_mosaic.version = 11 : i64} {
  func.func @_focal_loss_kernel(%arg0: i32, %arg1: memref<8x32xf32, #tpu.memory_space<vmem>>, %arg2: memref<8x1xi32, #tpu.memory_space<vmem>>, %arg3: memref<1x1x1xf32, #tpu.memory_space<vmem>>) attributes {dimension_semantics = [#tpu.dimension_semantics<parallel>], iteration_bounds = array<i64: 3>, scalar_prefetch = 0 : i64, scratch_operands = 0 : i64, tpu.core_type = #tpu.core_type<tc>, window_params = [{transform_indices = @transform_0, window_bounds = array<i64: 8, 32>}, {transform_indices = @transform_1, window_bounds = array<i64: 8, 1>}, {transform_indices = @transform_2, window_bounds = array<i64: 1, 1, 1>}]} {
    %c0 = arith.constant 0 : index
    %c0_0 = arith.constant 0 : index
    %0 = vector.load %arg1[%c0, %c0_0] : memref<8x32xf32, #tpu.memory_space<vmem>>, vector<8x32xf32>
    %c0_1 = arith.constant 0 : index
    %c0_2 = arith.constant 0 : index
    %1 = vector.load %arg2[%c0_1, %c0_2] : memref<8x1xi32, #tpu.memory_space<vmem>>, vector<8x1xi32>
    %cst = arith.constant dense<0xFF800000> : vector<8xf32>
    %2 = vector.multi_reduction <maximumf>, %0, %cst [1] : vector<8x32xf32> to vector<8xf32>
    %3 = vector.shape_cast %2 : vector<8xf32> to vector<8x1xf32>
    %4 = vector.broadcast %3 : vector<8x1xf32> to vector<8x32xf32>
    %5 = arith.subf %0, %4 : vector<8x32xf32>
    %6 = math.exp %5 : vector<8x32xf32>
    %cst_3 = arith.constant dense<0.000000e+00> : vector<8xf32>
    %7 = vector.multi_reduction <add>, %6, %cst_3 [1] : vector<8x32xf32> to vector<8xf32>
    %8 = vector.shape_cast %7 : vector<8xf32> to vector<8x1xf32>
    %9 = tpu.iota {dimensions = array<i32: 1>} : vector<8x32xi32>
    %10 = vector.broadcast %1 : vector<8x1xi32> to vector<8x32xi32>
    %11 = arith.cmpi eq, %9, %10 : vector<8x32xi32>
    %cst_4 = arith.constant 0.000000e+00 : f32
    %12 = vector.broadcast %cst_4 : f32 to vector<8x32xf32>
    %13 = arith.select %11, %5, %12 : vector<8x32xi1>, vector<8x32xf32>
    %cst_5 = arith.constant dense<0.000000e+00> : vector<8xf32>
    %14 = vector.multi_reduction <add>, %13, %cst_5 [1] : vector<8x32xf32> to vector<8xf32>
    %15 = vector.shape_cast %14 : vector<8xf32> to vector<8x1xf32>
    %16 = math.log %8 : vector<8x1xf32>
    %17 = arith.subf %15, %16 : vector<8x1xf32>
    %18 = math.exp %17 : vector<8x1xf32>
    %cst_6 = arith.constant 1.000000e+00 : f32
    %19 = vector.broadcast %cst_6 : f32 to vector<8x1xf32>
    %20 = arith.subf %19, %18 : vector<8x1xf32>
    %21 = arith.mulf %20, %20 : vector<8x1xf32>
    %22 = arith.mulf %21, %17 : vector<8x1xf32>
    %c2_i32 = arith.constant 2 : i32
    %23 = arith.cmpi eq, %arg0, %c2_i32 : i32
    %24 = arith.extui %23 : i1 to i32
    %c0_i32 = arith.constant 0 : i32
    %25 = arith.cmpi ne, %24, %c0_i32 : i32
    scf.if %25 {
      %c8_i32 = arith.constant 8 : i32
      %29 = arith.muli %arg0, %c8_i32 : i32
      %30 = tpu.iota {dimensions = array<i32: 0>} : vector<8x1xi32>
      %31 = vector.broadcast %29 : i32 to vector<8x1xi32>
      %32 = arith.addi %31, %30 : vector<8x1xi32>
      %c20_i32 = arith.constant 20 : i32
      %33 = vector.broadcast %c20_i32 : i32 to vector<8x1xi32>
      %34 = arith.cmpi slt, %32, %33 : vector<8x1xi32>
      %cst_9 = arith.constant 0.000000e+00 : f32
      %35 = vector.broadcast %cst_9 : f32 to vector<8x1xf32>
      %36 = arith.select %34, %22, %35 : vector<8x1xi1>, vector<8x1xf32>
      %cst_10 = arith.constant dense<0.000000e+00> : vector<1xf32>
      %37 = vector.multi_reduction <add>, %36, %cst_10 [0] : vector<8x1xf32> to vector<1xf32>
      %38 = vector.shape_cast %37 : vector<1xf32> to vector<1x1xf32>
      %39 = vector.shape_cast %38 : vector<1x1xf32> to vector<1x1x1xf32>
      %cst_11 = arith.constant 0.000000e+00 : f32
      %40 = vector.broadcast %cst_11 : f32 to vector<1x1x1xf32>
      %41 = arith.subf %40, %39 : vector<1x1x1xf32>
      %c0_12 = arith.constant 0 : index
      %c0_13 = arith.constant 0 : index
      %c0_14 = arith.constant 0 : index
      %42 = vector.load %arg3[%c0_12, %c0_13, %c0_14] : memref<1x1x1xf32, #tpu.memory_space<vmem>>, vector<1x1x1xf32>
      tpu.vector_store %arg3[%c0_12, %c0_13, %c0_14], %41 {strides = array<i32>} : memref<1x1x1xf32, #tpu.memory_space<vmem>>, vector<1x1x1xf32>,
    } else {
    }
    %c2_i32_7 = arith.constant 2 : i32
    %26 = arith.cmpi ne, %arg0, %c2_i32_7 : i32
    %27 = arith.extui %26 : i1 to i32
    %c0_i32_8 = arith.constant 0 : i32
    %28 = arith.cmpi ne, %27, %c0_i32_8 : i32
    scf.if %28 {
      %cst_9 = arith.constant dense<0.000000e+00> : vector<1xf32>
      %29 = vector.multi_reduction <add>, %22, %cst_9 [0] : vector<8x1xf32> to vector<1xf32>
      %30 = vector.shape_cast %29 : vector<1xf32> to vector<1x1xf32>
      %31 = vector.shape_cast %30 : vector<1x1xf32> to vector<1x1x1xf32>
      %cst_10 = arith.constant 0.000000e+00 : f32
      %32 = vector.broadcast %cst_10 : f32 to vector<1x1x1xf32>
      %33 = arith.subf %32, %31 : vector<1x1x1xf32>
      %c0_11 = arith.constant 0 : index
      %c0_12 = arith.constant 0 : index
      %c0_13 = arith.constant 0 : index
      %34 = vector.load %arg3[%c0_11, %c0_12, %c0_13] : memref<1x1x1xf32, #tpu.memory_space<vmem>>, vector<1x1x1xf32>
      tpu.vector_store %arg3[%c0_11, %c0_12, %c0_13], %33 {strides = array<i32>} : memref<1x1x1xf32, #tpu.memory_space<vmem>>, vector<1x1x1xf32>,
    } else {
    }
    return
  }
  func.func @transform_0(%arg0: i32) -> (i32, i32) {
    %c0_i32 = arith.constant 0 : i32
    %c0_i32_0 = arith.constant 0 : i32
    return %arg0, %c0_i32 : i32, i32
  }
  func.func @transform_1(%arg0: i32) -> (i32, i32) {
    %c0_i32 = arith.constant 0 : i32
    %c0_i32_0 = arith.constant 0 : i32
    return %arg0, %c0_i32 : i32, i32
  }
  func.func @transform_2(%arg0: i32) -> (i32, i32, i32) {
    %c0_i32 = arith.constant 0 : i32
    %c0_i32_0 = arith.constant 0 : i32
    %c0_i32_1 = arith.constant 0 : i32
    return %arg0, %c0_i32, %c0_i32_0 : i32, i32, i32
  }
}

</mosaic_0001>

<bundles_post_ra>
// kernel: tpu_custom_call.1
= control target key start
LH: loop header
LB: loop body
LE: loop exit
PB: predicated region body
PF: predicated region fallthrough
CT: control target
= control target key end

     0   :  { %s328_s9 = smov 0   ;;  %s362_s0 = inlined_call_operand.vmem [shape: f32[24,32], index: 0, kind: input, shape index: {}]   ;;  %s363_s1 = inlined_call_operand.vmem [shape: s32[24,1], index: 1, kind: input, shape index: {}]   ;;  %s364_s2 = inlined_call_operand.vmem [shape: f32[3,1,1], index: 2, kind: output, shape index: {}]  }
   0x1 LB: > { %s334_s10 = sadd.s32 4294967295, %s310_s9   ;;  %p280_p0 = scmp.ge.s32.totalorder %s310_s9, 1  ;;  %s310_s9 = sphi %s328_s9, %s12_s9  }
   0x2   : > { %p120_p1 = scmp.lt.s32.totalorder %s310_s9, 4 }
   0x4   : > { %p121_p2 = pnand %p280_p0, %p120_p1 }
   0x5   : > { %p143_p3 = scmp.lt.s32.totalorder (!%p121_p2), %s334_s10, 2  ;;  %p283_p4 = scmp.ne.s32.totalorder (!%p121_p2), %s334_s10, 2 }
   0x6   : > { %124 = sbr.rel (%p121_p2) target bundleno = 330 (0x14a), region = 28 }
   0xb   : > { %v312_v0 = vmov 0   ;;  %s144_s11 = scalar_select %p143_p3, %s334_s10, 2  ;;  %vm156_vm0 = vcmask 261120   ;;  %v166_v9 = vlaneseq }
   0xc   : > { %297 = vset.pattern.permute.xlu0 %v312_v0  ;;  %s284_s22 = sshll.u32 (!%p283_p4), %s334_s10, 3 }
   0xd   : > { %s281_s12 = sshll.u32 %s144_s11, 3  ;;  %s343_s15 = scalar_lea.vmem %s364_s2, %s144_s11  ;;  %v167_v10 = vand.u32 127, %v166_v9 }
   0xe   : > { %s146_s18 = scalar_lea.vmem %s362_s0, %s281_s12  ;;  %s150_s21 = scalar_lea.vmem %s363_s1, %s281_s12 }
   0xf   : > { %v154_v1 = vld [vmem:[%s146_s18] sm:$0xff] }
  0x10   : > { %v157_v2 = vsel %vm156_vm0, %v154_v1, -inf  ;;  %v155_v3 = vld [vmem:[%s150_s21] sm:$0xff] }
  0x11   : > { %158 = vmax.xlane.f32.xlu0 %v157_v2 }
  0x25   : > { %169 = vperm.xlu0 %297, %v155_v3  }
  0x84   : > { %v159_v4 = vpop.xlane.xlu0 %158 }
  0x85   : > { %v160_v5 = vsub.f32 %v154_v1, %v159_v4 }
  0x87   : > { %v161_v6 = vmul.f32 1.442695, %v160_v5 }
  0x89   : > { %298 = vpow2.f32 %v161_v6 }
  0x8f   : > { %v299_v7 = vpop.eup %298 }
  0x90   : > { %v163_v8 = vsel %vm156_vm0, %v299_v7, 0.0 }
  0x91   : > { %164 = vadd.xlane.f32.xlu1 %v163_v8 }
  0x97   : > { %v170_v11 = vpop.permute.xlu0 %169 }
  0x98   : > { %vm171_vm1 = vcmp.eq.s32.totalorder %v167_v10, %v170_v11 }
  0x99   : > { %v172_v12 = vsel %vm171_vm1, %v160_v5, 0.0 }
  0x9a   : > { %v173_v13 = vsel %vm156_vm0, %v172_v12, 0.0 }
  0x9b   : > { %174 = vadd.xlane.f32.xlu1 %v173_v13 }
 0x104   : > { %v165_v14 = vpop.xlane.xlu1 %164 }
 0x105   : > { %300 = vlog2.f32 %v165_v14 }
 0x10b   : > { %v301_v15 = vpop.eup %300 }
 0x10c   : > { %v177_v16 = vmul.f32 0.6931472, %v301_v15 }
 0x10e   : > { %v175_v17 = vpop.xlane.xlu1 %174 }
 0x10f   : > { %v178_v18 = vsub.f32 %v175_v17, %v177_v16 }
 0x111   : > { %v179_v19 = vmul.f32 1.442695, %v178_v18 }
 0x113   : > { %302 = vpow2.f32 %v179_v19 }
 0x119   : > { %v303_v20 = vpop.eup %302 }
 0x11a   : > { %v181_v21 = vsub.f32 1.0, %v303_v20  ;;  %187 = sbr.rel (%p283_p4) target bundleno = 308 (0x134), region = 32 }
 0x11c   : > { %v182_v22 = vmul.f32 %v181_v21, %v181_v21 }
 0x11e   : > { %v183_v23 = vmul.f32 %v182_v22, %v178_v18 }
 0x11f   : > { %v190_v24 = vshrl.u32 %v166_v9, 7  ;;  %v191_v25 = vstv %s284_s22  ;;  %vm202_vm3 = vcmask 0  }
 0x121   : > { %v192_v26 = vadd.s32 %v191_v25, %v190_v24 }
 0x123   : > { %vm193_vm2 = vcmp.lt.s32.totalorder %v192_v26, 20 }
 0x124   : > { %v194_v27 = vsel %vm193_vm2, %v183_v23, 0.0 }
 0x125   : > { %v195_v28 = vrot.slane %v194_v27, 4 }
 0x127   : > { %v196_v29 = vadd.f32 %v195_v28, %v194_v27 }
 0x129   : > { %v197_v30 = vrot.slane %v196_v29, 2 }
 0x12b   : > { %v198_v31 = vadd.f32 %v197_v30, %v196_v29 }
 0x12d   : > { %v199_v32 = vrot.slane %v198_v31, 1 }
 0x12f   : > { %v200_v33 = vadd.f32 %v199_v32, %v198_v31 }
 0x131   : > { %v201_v34 = vsub.f32 0.0, %v200_v33 }
 0x133   : > { %203 = vst.msk [vmem:[%s343_s15] sm:$0x1] %vm202_vm3, %v201_v34 }
 0x134 PF: > { %p285_p5 = scmp.eq.s32.totalorder %s334_s10, 2 }
 0x136   : > { %207 = sbr.rel (%p285_p5) target bundleno = 330 (0x14a), region = 36 }
 0x13b   : > { %v208_v35 = vrot.slane %v183_v23, 4  ;;  %vm215_vm4 = vcmask 0  }
 0x13d   : > { %v209_v36 = vadd.f32 %v208_v35, %v183_v23 }
 0x13f   : > { %v210_v37 = vrot.slane %v209_v36, 2 }
 0x141   : > { %v211_v38 = vadd.f32 %v210_v37, %v209_v36 }
 0x143   : > { %v212_v39 = vrot.slane %v211_v38, 1 }
 0x145   : > { %v213_v40 = vadd.f32 %v212_v39, %v211_v38 }
 0x147   : > { %v214_v41 = vsub.f32 0.0, %v213_v40 }
 0x149   : > { %216 = vst.msk [vmem:[%s343_s15] sm:$0x1] %vm215_vm4, %v214_v41 }
 0x14a PF: > { %s12_s9 = sadd.s32 1, %s310_s9  }
 0x14b   : > { %p9_p6 = scmp.ge.s32.totalorder %s12_s9, 5  }
 0x14d   :  { %11 = sbr.rel (!%p9_p6) target bundleno = 1 (0x1), region = 69 }

</bundles_post_ra>
